<compile_context>
chip_gen: v5e
topology: v5e:2x2
jax: 0.10.0
libtpu: 0.0.40
codegen_flags: <defaults>
</compile_context>

<pallas_src>
import jax
import jax.numpy as jnp
from jax.experimental import pallas as pl
from jax.experimental.pallas import tpu as pltpu


# ---------------------------------------------------------------------------
# Pallas kernels: pair-wise FM second-order interaction + reduction
#   field refs: (D, TB) VMEM tiles (factor axis on sublanes, batch on lanes)
#   o_ref     : (2, TB) lane-dense output (row 0 = pred_i, row 1 = pred_j)
# ---------------------------------------------------------------------------
def _fm_pair_body(shared_refs, ei_ref, ej_ref, o_ref):
    # Partial sums over the fields common to both pairs (u [, context]) are
    # computed once and reused for pred_i and pred_j.
    s_sh = None
    ss_sh = None
    for r in shared_refs:
        x = r[...].astype(jnp.float32)
        s_sh = x if s_sh is None else s_sh + x
        ss_sh = x * x if ss_sh is None else ss_sh + x * x

    def fm_one(ex_ref):
        ex = ex_ref[...].astype(jnp.float32)
        s = s_sh + ex                       # (D, TB)  sum over fields
        ss = ss_sh + ex * ex                # (D, TB)  sum of squares
        # 0.5 * sum_d [ (sum_f x)^2 - sum_f x^2 ]  ->  lane-dense (1, TB)
        return 0.5 * jnp.sum(s * s - ss, axis=0, keepdims=True)

    o_ref[pl.ds(0, 1), :] = fm_one(ei_ref).astype(o_ref.dtype)
    o_ref[pl.ds(1, 1), :] = fm_one(ej_ref).astype(o_ref.dtype)


def _pair_fm_kernel_ctx(eu_ref, ec_ref, ei_ref, ej_ref, o_ref):
    _fm_pair_body((eu_ref, ec_ref), ei_ref, ej_ref, o_ref)


def _pair_fm_kernel_noctx(eu_ref, ei_ref, ej_ref, o_ref):
    _fm_pair_body((eu_ref,), ei_ref, ej_ref, o_ref)


# ---------------------------------------------------------------------------
# Wrapper: tiling over the (lane-mapped) batch axis, with padding
# ---------------------------------------------------------------------------
def pair_fm_pallas(eu, ei, ej, ec=None, *, batch_tile=512):
    """Pair-wise FM from per-field embedding slabs.

    eu, ei, ej, (ec): (D, B) arrays — factor axis first, batch on lanes.
    Returns (pred_i, pred_j), each (B,) float32.
    """
    D, B = eu.shape
    assert batch_tile % 128 == 0, "batch_tile must be a multiple of 128"

    # Lane-dense tile; shrink for tiny batches, pad B up to a multiple of it.
    tb = batch_tile if B >= batch_tile else ((B + 127) // 128) * 128
    b_pad = ((B + tb - 1) // tb) * tb

    def pad(x):
        if b_pad == B:
            return x
        return jnp.pad(x, ((0, 0), (0, b_pad - B)))

    if ec is not None:
        fields = [pad(eu), pad(ec), pad(ei), pad(ej)]
        kernel = _pair_fm_kernel_ctx
    else:
        fields = [pad(eu), pad(ei), pad(ej)]
        kernel = _pair_fm_kernel_noctx

    in_spec = pl.BlockSpec((D, tb), lambda b: (0, b))
    out_spec = pl.BlockSpec((2, tb), lambda b: (0, b))

    out = pl.pallas_call(
        kernel,
        out_shape=jax.ShapeDtypeStruct((2, b_pad), jnp.float32),
        grid_spec=pltpu.PrefetchScalarGridSpec(
            num_scalar_prefetch=0,
            grid=(b_pad // tb,),
            in_specs=[in_spec] * len(fields),
            out_specs=out_spec,
        ),
        compiler_params=pltpu.CompilerParams(
            dimension_semantics=("parallel",),
        ),
    )(*fields)

    # .view(-1) in the PyTorch module
    return out[0, :B], out[1, :B]


# ---------------------------------------------------------------------------
# PairFM module forward (glue: deterministic params + deduped embedding gather)
# ---------------------------------------------------------------------------
def make_pair_fm_params(max_dim, factors, key):
    # nn.init.normal_(self.embeddings.weight, std=0.01)
    emb = 0.01 * jax.random.normal(key, (max_dim, factors), dtype=jnp.float32)
    # bias embedding (init 0) and bias_ scalar exist in __init__ but are NOT
    # used in forward(); kept here only for shape fidelity.
    bias = jnp.zeros((max_dim, 1), dtype=jnp.float32)
    bias_ = jnp.zeros((1,), dtype=jnp.float32)
    return {"embeddings": emb, "bias": bias, "bias_": bias_}


def pair_fm_forward(params, u, i, j, context=None, *, batch_tile=512):
    # Gather each distinct field once and present it in (D, B) lane-dense
    # layout (pure layout plumbing on the XLA side).
    emb_t = params["embeddings"].T                     # (D, max_dim)
    eu = jnp.take(emb_t, u, axis=1)                    # (D, B)
    ei = jnp.take(emb_t, i, axis=1)
    ej = jnp.take(emb_t, j, axis=1)
    ec = jnp.take(emb_t, context, axis=1) if context is not None else None
    return pair_fm_pallas(eu, ei, ej, ec, batch_tile=batch_tile)


# ---------------------------------------------------------------------------
# Pure-JAX reference (mirrors the PyTorch forward exactly)
# ---------------------------------------------------------------------------
def _reference_forward(params, u, i, j, context=None):
    emb = params["embeddings"]
    if context is None:
        idx_ui = jnp.stack((u, i), axis=1)
        idx_uj = jnp.stack((u, j), axis=1)
    else:
        idx_ui = jnp.stack((u, i, context), axis=1)
        idx_uj = jnp.stack((u, j, context), axis=1)

    def fm(x):                                         # x: (B, F, D)
        s = jnp.sum(x, axis=1)
        ss = jnp.sum(x * x, axis=1)
        return 0.5 * jnp.sum(s * s - ss, axis=1)

    return (fm(jnp.take(emb, idx_ui, axis=0)),
            fm(jnp.take(emb, idx_uj, axis=0)))


# ---------------------------------------------------------------------------
if __name__ == "__main__":
    key = jax.random.PRNGKey(0)
    k_params, k_u, k_i, k_j, k_c = jax.random.split(key, 5)

    user_num = 32
    max_dim = 64          # users + items + context vocab
    factors = 84          # module default
    batch = 16

    params = make_pair_fm_params(max_dim, factors, k_params)

    u = jax.random.randint(k_u, (batch,), 0, user_num, dtype=jnp.int32)
    i = jax.random.randint(k_i, (batch,), user_num, max_dim, dtype=jnp.int32)
    j = jax.random.randint(k_j, (batch,), user_num, max_dim, dtype=jnp.int32)
    context = jax.random.randint(k_c, (batch,), 0, max_dim, dtype=jnp.int32)

    # context path (3 fields)
    pred_i, pred_j = pair_fm_forward(params, u, i, j, context)
    jax.block_until_ready((pred_i, pred_j))
    ref_i, ref_j = _reference_forward(params, u, i, j, context)
    assert pred_i.shape == (batch,) and pred_j.shape == (batch,)
    assert jnp.allclose(pred_i, ref_i, atol=1e-6, rtol=1e-5)
    assert jnp.allclose(pred_j, ref_j, atol=1e-6, rtol=1e-5)

    # context=None path (2 fields)
    pred_i2, pred_j2 = pair_fm_forward(params, u, i, j, None)
    jax.block_until_ready((pred_i2, pred_j2))
    ref_i2, ref_j2 = _reference_forward(params, u, i, j, None)
    assert jnp.allclose(pred_i2, ref_i2, atol=1e-6, rtol=1e-5)
    assert jnp.allclose(pred_j2, ref_j2, atol=1e-6, rtol=1e-5)

    print("KERNEL_OK")
</pallas_src>

<mosaic_0001>
module attributes {stable_mosaic.version = 11 : i64} {
  func.func @_pair_fm_kernel_ctx(%arg0: i32, %arg1: memref<84x128xf32, #tpu.memory_space<vmem>>, %arg2: memref<84x128xf32, #tpu.memory_space<vmem>>, %arg3: memref<84x128xf32, #tpu.memory_space<vmem>>, %arg4: memref<84x128xf32, #tpu.memory_space<vmem>>, %arg5: memref<2x128xf32, #tpu.memory_space<vmem>>) attributes {dimension_semantics = [#tpu.dimension_semantics<parallel>], iteration_bounds = array<i64: 1>, scalar_prefetch = 0 : i64, scratch_operands = 0 : i64, tpu.core_type = #tpu.core_type<tc>, window_params = [{transform_indices = @transform_0, window_bounds = array<i64: 84, 128>}, {transform_indices = @transform_1, window_bounds = array<i64: 84, 128>}, {transform_indices = @transform_2, window_bounds = array<i64: 84, 128>}, {transform_indices = @transform_3, window_bounds = array<i64: 84, 128>}, {transform_indices = @transform_4, window_bounds = array<i64: 2, 128>}]} {
    %c0 = arith.constant 0 : index
    %c0_0 = arith.constant 0 : index
    %0 = vector.load %arg1[%c0, %c0_0] : memref<84x128xf32, #tpu.memory_space<vmem>>, vector<84x128xf32>
    %1 = arith.mulf %0, %0 : vector<84x128xf32>
    %c0_1 = arith.constant 0 : index
    %c0_2 = arith.constant 0 : index
    %2 = vector.load %arg2[%c0_1, %c0_2] : memref<84x128xf32, #tpu.memory_space<vmem>>, vector<84x128xf32>
    %3 = arith.addf %0, %2 : vector<84x128xf32>
    %4 = arith.mulf %2, %2 : vector<84x128xf32>
    %5 = arith.addf %1, %4 : vector<84x128xf32>
    %c0_3 = arith.constant 0 : index
    %c0_4 = arith.constant 0 : index
    %6 = vector.load %arg3[%c0_3, %c0_4] : memref<84x128xf32, #tpu.memory_space<vmem>>, vector<84x128xf32>
    %7 = arith.addf %3, %6 : vector<84x128xf32>
    %8 = arith.mulf %6, %6 : vector<84x128xf32>
    %9 = arith.addf %5, %8 : vector<84x128xf32>
    %10 = arith.mulf %7, %7 : vector<84x128xf32>
    %11 = arith.subf %10, %9 : vector<84x128xf32>
    %cst = arith.constant dense<0.000000e+00> : vector<128xf32>
    %12 = vector.multi_reduction <add>, %11, %cst [0] : vector<84x128xf32> to vector<128xf32>
    %13 = vector.shape_cast %12 : vector<128xf32> to vector<1x128xf32>
    %cst_5 = arith.constant 5.000000e-01 : f32
    %14 = vector.broadcast %cst_5 : f32 to vector<1x128xf32>
    %15 = arith.mulf %14, %13 : vector<1x128xf32>
    %c0_6 = arith.constant 0 : index
    %c0_7 = arith.constant 0 : index
    %16 = vector.load %arg5[%c0_6, %c0_7] : memref<2x128xf32, #tpu.memory_space<vmem>>, vector<1x128xf32>
    tpu.vector_store %arg5[%c0_6, %c0_7], %15 {strides = array<i32>} : memref<2x128xf32, #tpu.memory_space<vmem>>, vector<1x128xf32>,
    %c0_8 = arith.constant 0 : index
    %c0_9 = arith.constant 0 : index
    %17 = vector.load %arg4[%c0_8, %c0_9] : memref<84x128xf32, #tpu.memory_space<vmem>>, vector<84x128xf32>
    %18 = arith.addf %3, %17 : vector<84x128xf32>
    %19 = arith.mulf %17, %17 : vector<84x128xf32>
    %20 = arith.addf %5, %19 : vector<84x128xf32>
    %21 = arith.mulf %18, %18 : vector<84x128xf32>
    %22 = arith.subf %21, %20 : vector<84x128xf32>
    %cst_10 = arith.constant dense<0.000000e+00> : vector<128xf32>
    %23 = vector.multi_reduction <add>, %22, %cst_10 [0] : vector<84x128xf32> to vector<128xf32>
    %24 = vector.shape_cast %23 : vector<128xf32> to vector<1x128xf32>
    %cst_11 = arith.constant 5.000000e-01 : f32
    %25 = vector.broadcast %cst_11 : f32 to vector<1x128xf32>
    %26 = arith.mulf %25, %24 : vector<1x128xf32>
    %c1 = arith.constant 1 : index
    %c0_12 = arith.constant 0 : index
    %27 = vector.load %arg5[%c1, %c0_12] : memref<2x128xf32, #tpu.memory_space<vmem>>, vector<1x128xf32>
    tpu.vector_store %arg5[%c1, %c0_12], %26 {strides = array<i32>} : memref<2x128xf32, #tpu.memory_space<vmem>>, vector<1x128xf32>,
    return
  }
  func.func @transform_0(%arg0: i32) -> (i32, i32) {
    %c0_i32 = arith.constant 0 : i32
    %c0_i32_0 = arith.constant 0 : i32
    return %c0_i32, %arg0 : i32, i32
  }
  func.func @transform_1(%arg0: i32) -> (i32, i32) {
    %c0_i32 = arith.constant 0 : i32
    %c0_i32_0 = arith.constant 0 : i32
    return %c0_i32, %arg0 : i32, i32
  }
  func.func @transform_2(%arg0: i32) -> (i32, i32) {
    %c0_i32 = arith.constant 0 : i32
    %c0_i32_0 = arith.constant 0 : i32
    return %c0_i32, %arg0 : i32, i32
  }
  func.func @transform_3(%arg0: i32) -> (i32, i32) {
    %c0_i32 = arith.constant 0 : i32
    %c0_i32_0 = arith.constant 0 : i32
    return %c0_i32, %arg0 : i32, i32
  }
  func.func @transform_4(%arg0: i32) -> (i32, i32) {
    %c0_i32 = arith.constant 0 : i32
    %c0_i32_0 = arith.constant 0 : i32
    return %c0_i32, %arg0 : i32, i32
  }
}

</mosaic_0001>

<bundles_post_ra>
// kernel: tpu_custom_call.1
= control target key start
LH: loop header
LB: loop body
LE: loop exit
PB: predicated region body
PF: predicated region fallthrough
CT: control target
= control target key end

     0   :  { %9 = vsyncpa [#allocation3], 0  ;;  %s612_s0 = inlined_call_operand.hbm [shape: f32[84,128], index: 0, kind: input, shape index: {}]   ;;  %s613_s1 = inlined_call_operand.hbm [shape: f32[84,128], index: 1, kind: input, shape index: {}]   ;;  %s614_s2 = inlined_call_operand.hbm [shape: f32[84,128], index: 2, kind: input, shape index: {}]   ;;  %s615_s3 = inlined_call_operand.hbm [shape: f32[84,128], index: 3, kind: input, shape index: {}]   ;;  %s616_s4 = inlined_call_operand.hbm [shape: f32[2,128], index: 4, kind: output, shape index: {}]  }
   0x1   :  { %10 = vsyncpa [#allocation6], 0 }
   0x2   :  { %11 = vsyncpa [#allocation9], 0 }
   0x3   :  { %12 = vsyncpa [#allocation4], 0  ;;  %s30_s17 = sshll.u32 %s613_s1, 4  ;;  %s472_s18 = smov [#allocation5]   ;;  %s31_s17 = int_to_ptr.hbm [resolvable:$true] %s30_s17 }
   0x4   :  { %s32_s19 = sshll.u32 %s472_s18, 4  ;;  %s17_s22 = sshll.u32 %s612_s0, 4  ;;  %s33_s19 = int_to_ptr.vmem [resolvable:$true] %s32_s19  ;;  %s18_s22 = int_to_ptr.hbm [resolvable:$true] %s17_s22 }
   0x5   :  { %s473_s23 = smov 128   ;;  %s474_s24 = smov 8  }
   0x6   :  { %38 = dma.hbm_to_vmem [thread:$0]  %s31_s17, 1408, %s33_s19, [#allocation6], %s473_s23, %s473_s23, %s474_s24  }
   0x7   :  { %s475_s25 = smov [#allocation2]   ;;  %s43_s29 = sshll.u32 %s614_s2, 4  ;;  %s44_s29 = int_to_ptr.hbm [resolvable:$true] %s43_s29 }
   0x8   :  { %s19_s26 = sshll.u32 %s475_s25, 4  ;;  %s56_s5 = sshll.u32 %s615_s3, 4  ;;  %s20_s26 = int_to_ptr.vmem [resolvable:$true] %s19_s26  ;;  %s57_s5 = int_to_ptr.hbm [resolvable:$true] %s56_s5 }
   0x9   :  { %25 = dma.hbm_to_vmem [thread:$0]  %s18_s22, 1408, %s20_s26, [#allocation3], %s473_s23, %s473_s23, %s474_s24  }
   0xa   :  { %s476_s6 = smov [#allocation7]   ;;  %s477_s0 = smov [#allocation8]  }
   0xb   :  { %s45_s7 = sshll.u32 %s476_s6, 4  ;;  %s58_s8 = sshll.u32 %s477_s0, 4  ;;  %s46_s7 = int_to_ptr.vmem [resolvable:$true] %s45_s7  ;;  %s59_s8 = int_to_ptr.vmem [resolvable:$true] %s58_s8 }
   0xc   :  { %51 = dma.hbm_to_vmem [thread:$0]  %s44_s29, 1408, %s46_s7, [#allocation6], %s473_s23, %s473_s23, %s474_s24  }
   0xd   :  { %64 = dma.hbm_to_vmem [thread:$0]  %s57_s5, 1408, %s59_s8, [#allocation9], %s473_s23, %s473_s23, %s474_s24  }
   0xe   :  { %464 = dma.done.wait [#allocation3], 1408  }
   0xf   :  { %465 = vsyncadd [#allocation3], 4294965888 }
  0x10   :  { %466 = dma.done.wait [#allocation6], 2816  }
  0x11   :  { %467 = vsyncadd [#allocation6], 4294964480 }
  0x12   :  { %468 = dma.done.wait [#allocation9], 1408  }
  0x13   :  { %469 = vsyncadd [#allocation9], 4294965888  ;;  %v81_v0 = vld [vmem:[#allocation2] sm:$0xff]  ;;  %v82_v1 = vld [vmem:[#allocation2 + $0x8] sm:$0xff]  ;;  %vm222_vm0 = vcmask 1043456   ;;  %s478_s2 = smov [#allocation10]  }
  0x14   :  { %v83_v2 = vld [vmem:[#allocation2 + $0x10] sm:$0xff]  ;;  %v84_v3 = vld [vmem:[#allocation2 + $0x18] sm:$0xff]  ;;  %v85_v4 = vld [vmem:[#allocation2 + $0x20] sm:$0xff]  ;;  %v92_v12 = vmul.f32 %v81_v0, %v81_v0  ;;  %v93_v13 = vmul.f32 %v82_v1, %v82_v1  ;;  %s323_s3 = sshll.u32 %s478_s2, 4  ;;  %s325_s11 = sshll.u32 %s616_s4, 4  ;;  %s324_s3 = int_to_ptr.vmem [resolvable:$true] %s323_s3  ;;  %s326_s11 = int_to_ptr.hbm [resolvable:$true] %s325_s11 }
  0x15   :  { %v86_v5 = vld [vmem:[#allocation2 + $0x28] sm:$0xff]  ;;  %v87_v6 = vld [vmem:[#allocation2 + $0x30] sm:$0xff]  ;;  %v88_v7 = vld [vmem:[#allocation2 + $0x38] sm:$0xff]  ;;  %v94_v14 = vmul.f32 %v83_v2, %v83_v2  ;;  %v95_v15 = vmul.f32 %v84_v3, %v84_v3  ;;  %v96_v19 = vmul.f32 %v85_v4, %v85_v4 }
  0x16   :  { %v89_v8 = vld [vmem:[#allocation2 + $0x40] sm:$0xff]  ;;  %v90_v9 = vld [vmem:[#allocation2 + $0x48] sm:$0xff]  ;;  %v91_v10 = vld [vmem:[#allocation2 + $0x50] sm:$0xf]  ;;  %v97_v20 = vmul.f32 %v86_v5, %v86_v5  ;;  %v98_v21 = vmul.f32 %v87_v6, %v87_v6  ;;  %v99_v22 = vmul.f32 %v88_v7, %v88_v7 }
  0x17   :  { %v103_v11 = vld [vmem:[#allocation5] sm:$0xff]  ;;  %v104_v16 = vld [vmem:[#allocation5 + $0x8] sm:$0xff]  ;;  %v105_v17 = vld [vmem:[#allocation5 + $0x10] sm:$0xff]  ;;  %v100_v26 = vmul.f32 %v89_v8, %v89_v8  ;;  %v516_v27 = vmul.f32 %v90_v9, %v90_v9  ;;  %v102_v28 = vmul.f32 %v91_v10, %v91_v10 }
  0x18   :  { %v106_v18 = vld [vmem:[#allocation5 + $0x18] sm:$0xff]  ;;  %v107_v23 = vld [vmem:[#allocation5 + $0x20] sm:$0xff]  ;;  %v108_v24 = vld [vmem:[#allocation5 + $0x28] sm:$0xff]  ;;  %v518_v31 = vadd.f32 %v103_v11, %v81_v0  ;;  %v520_v34 = vadd.f32 %v104_v16, %v82_v1  ;;  %v522_v35 = vadd.f32 %v105_v17, %v83_v2  ;;  %v125_v37 = vmul.f32 %v103_v11, %v103_v11 }
  0x19   :  { %v109_v25 = vld [vmem:[#allocation5 + $0x30] sm:$0xff]  ;;  %v110_v29 = vld [vmem:[#allocation5 + $0x38] sm:$0xff]  ;;  %v111_v30 = vld [vmem:[#allocation5 + $0x40] sm:$0xff]  ;;  %v524_v36 = vadd.f32 %v106_v18, %v84_v3  ;;  %v526_v38 = vadd.f32 %v107_v23, %v85_v4  ;;  %v528_v39 = vadd.f32 %v108_v24, %v86_v5  ;;  %v126_v41 = vmul.f32 %v104_v16, %v104_v16 }
  0x1a   :  { %v112_v32 = vld [vmem:[#allocation5 + $0x48] sm:$0xff]  ;;  %v113_v33 = vld [vmem:[#allocation5 + $0x50] sm:$0xf]  ;;  %v530_v40 = vadd.f32 %v109_v25, %v87_v6  ;;  %v532_v42 = vadd.f32 %v110_v29, %v88_v7  ;;  %v534_v43 = vadd.f32 %v111_v30, %v89_v8  ;;  %v127_v44 = vmul.f32 %v105_v17, %v105_v17  ;;  %v147_v46 = vld [vmem:[#allocation7] sm:$0xff] }
  0x1b   :  { %v128_v45 = vmul.f32 %v106_v18, %v106_v18  ;;  %v536_v47 = vadd.f32 %v112_v32, %v90_v9  ;;  %v538_v48 = vadd.f32 %v113_v33, %v91_v10  ;;  %v129_v49 = vmul.f32 %v107_v23, %v107_v23  ;;  %v148_v51 = vld [vmem:[#allocation7 + $0x8] sm:$0xff]  ;;  %v149_v52 = vld [vmem:[#allocation7 + $0x10] sm:$0xff]  ;;  %v150_v60 = vld [vmem:[#allocation7 + $0x18] sm:$0xff] }
  0x1c   :  { %v130_v50 = vmul.f32 %v108_v24, %v108_v24  ;;  %v131_v53 = vmul.f32 %v109_v25, %v109_v25  ;;  %v132_v54 = vmul.f32 %v110_v29, %v110_v29  ;;  %v133_v55 = vmul.f32 %v111_v30, %v111_v30  ;;  %v151_v3 = vld [vmem:[#allocation7 + $0x20] sm:$0xff]  ;;  %v152_v9 = vld [vmem:[#allocation7 + $0x28] sm:$0xff]  ;;  %v154_v17 = vld [vmem:[#allocation7 + $0x38] sm:$0xff] }
  0x1d   :  { %v134_v56 = vmul.f32 %v112_v32, %v112_v32  ;;  %v135_v57 = vmul.f32 %v113_v33, %v113_v33  ;;  %v540_v58 = vadd.f32 %v125_v37, %v92_v12  ;;  %v542_v59 = vadd.f32 %v126_v41, %v93_v13  ;;  %v155_v18 = vld [vmem:[#allocation7 + $0x40] sm:$0xff]  ;;  %v157_v29 = vld [vmem:[#allocation7 + $0x50] sm:$0xf] }
  0x1e   :  { %v169_v61 = vmul.f32 %v147_v46, %v147_v46  ;;  %v544_v62 = vadd.f32 %v127_v44, %v94_v14  ;;  %v546_v63 = vadd.f32 %v128_v45, %v95_v15  ;;  %v170_v0 = vmul.f32 %v148_v51, %v148_v51  ;;  %v153_v15 = vld [vmem:[#allocation7 + $0x30] sm:$0xff] }
  0x1f   :  { %v171_v1 = vmul.f32 %v149_v52, %v149_v52  ;;  %v548_v2 = vadd.f32 %v129_v49, %v96_v19  ;;  %v158_v4 = vadd.f32 %v147_v46, %v518_v31  ;;  %v159_v5 = vadd.f32 %v148_v51, %v520_v34  ;;  %v156_v46 = vld [vmem:[#allocation7 + $0x48] sm:$0xff] }
  0x20   :  { %v160_v6 = vadd.f32 %v149_v52, %v522_v35  ;;  %v553_v7 = vadd.f32 %v130_v50, %v97_v20  ;;  %v555_v8 = vadd.f32 %v131_v53, %v98_v21  ;;  %v161_v10 = vadd.f32 %v150_v60, %v524_v36 }
  0x21   :  { %v172_v11 = vmul.f32 %v150_v60, %v150_v60  ;;  %v558_v12 = vadd.f32 %v132_v54, %v99_v22  ;;  %v560_v13 = vadd.f32 %v133_v55, %v100_v26  ;;  %v562_v14 = vadd.f32 %v135_v57, %v102_v28 }
  0x22   :  { %v180_v16 = vadd.f32 %v169_v61, %v540_v58  ;;  %v162_v19 = vadd.f32 %v151_v3, %v526_v38  ;;  %v173_v20 = vmul.f32 %v151_v3, %v151_v3  ;;  %v181_v21 = vadd.f32 %v170_v0, %v542_v59 }
  0x23   :  { %v182_v23 = vadd.f32 %v171_v1, %v544_v62  ;;  %v163_v24 = vadd.f32 %v152_v9, %v528_v39  ;;  %v191_v22 = vmul.f32 %v158_v4, %v158_v4  ;;  %v192_v25 = vmul.f32 %v159_v5, %v159_v5 }
  0x24   :  { %v193_v26 = vmul.f32 %v160_v6, %v160_v6  ;;  %v164_v28 = vadd.f32 %v153_v15, %v530_v40  ;;  %v174_v30 = vmul.f32 %v152_v9, %v152_v9  ;;  %v183_v32 = vadd.f32 %v172_v11, %v546_v63 }
  0x25   :  { %v194_v33 = vmul.f32 %v161_v10, %v161_v10  ;;  %v165_v37 = vadd.f32 %v154_v17, %v532_v42  ;;  %v166_v41 = vadd.f32 %v155_v18, %v534_v43  ;;  %v175_v44 = vmul.f32 %v153_v15, %v153_v15  ;;  %v233_v15 = vld [vmem:[#allocation8] sm:$0xff] }
  0x26   :  { %v202_v45 = vsub.f32 %v191_v22, %v180_v16  ;;  %v184_v49 = vadd.f32 %v173_v20, %v548_v2  ;;  %v195_v50 = vmul.f32 %v162_v19, %v162_v19  ;;  %v203_v51 = vsub.f32 %v192_v25, %v181_v21  ;;  %v234_v20 = vld [vmem:[#allocation8 + $0x8] sm:$0xff] }
  0x27   :  { %v204_v52 = vsub.f32 %v193_v26, %v182_v23  ;;  %v168_v53 = vadd.f32 %v157_v29, %v538_v48  ;;  %v176_v54 = vmul.f32 %v154_v17, %v154_v17  ;;  %v177_v55 = vmul.f32 %v155_v18, %v155_v18 }
  0x28   :  { %v179_v57 = vmul.f32 %v157_v29, %v157_v29  ;;  %v185_v60 = vadd.f32 %v174_v30, %v553_v7  ;;  %v196_v61 = vmul.f32 %v163_v24, %v163_v24  ;;  %v205_v0 = vsub.f32 %v194_v33, %v183_v32  ;;  %v235_v24 = vld [vmem:[#allocation8 + $0x10] sm:$0xff] }
  0x29   :  { %v213_v1 = vadd.f32 %v203_v51, %v202_v45  ;;  %v577_v3 = vadd.f32 %v134_v56, %v516_v27  ;;  %v167_v4 = vadd.f32 %v156_v46, %v536_v47  ;;  %v178_v5 = vmul.f32 %v156_v46, %v156_v46 }
  0x2a   :  { %v186_v6 = vadd.f32 %v175_v44, %v555_v8  ;;  %v197_v9 = vmul.f32 %v164_v28, %v164_v28  ;;  %v206_v10 = vsub.f32 %v195_v50, %v184_v49  ;;  %v187_v16 = vadd.f32 %v176_v54, %v558_v12  ;;  %v236_v28 = vld [vmem:[#allocation8 + $0x18] sm:$0xff]  ;;  %v237_v44 = vld [vmem:[#allocation8 + $0x20] sm:$0xff] }
  0x2b   :  { %v214_v11 = vadd.f32 %v213_v1, %v204_v52  ;;  %v188_v17 = vadd.f32 %v177_v55, %v560_v13  ;;  %v190_v18 = vadd.f32 %v179_v57, %v562_v14  ;;  %v198_v19 = vmul.f32 %v165_v37, %v165_v37  ;;  %v238_v52 = vld [vmem:[#allocation8 + $0x28] sm:$0xff] }
  0x2c   :  { %v199_v21 = vmul.f32 %v166_v41, %v166_v41  ;;  %v201_v27 = vmul.f32 %v168_v53, %v168_v53  ;;  %v207_v56 = vsub.f32 %v196_v61, %v185_v60  ;;  %v189_v22 = vadd.f32 %v178_v5, %v577_v3  ;;  %v239_v61 = vld [vmem:[#allocation8 + $0x30] sm:$0xff] }
  0x2d   :  { %v215_v23 = vadd.f32 %v214_v11, %v205_v0  ;;  %v255_v25 = vmul.f32 %v233_v15, %v233_v15  ;;  %v208_v26 = vsub.f32 %v197_v9, %v186_v6  ;;  %v244_v30 = vadd.f32 %v233_v15, %v518_v31 }
  0x2e   :  { %v256_v32 = vmul.f32 %v234_v20, %v234_v20  ;;  %v200_v33 = vmul.f32 %v167_v4, %v167_v4  ;;  %v245_v45 = vadd.f32 %v234_v20, %v520_v34  ;;  %v246_v37 = vadd.f32 %v235_v24, %v522_v35 }
  0x2f   :  { %v216_v29 = vadd.f32 %v215_v23, %v206_v10  ;;  %v257_v41 = vmul.f32 %v235_v24, %v235_v24  ;;  %v209_v46 = vsub.f32 %v198_v19, %v187_v16  ;;  %v210_v49 = vsub.f32 %v199_v21, %v188_v17 }
  0x30   :  { %v212_v50 = vsub.f32 %v201_v27, %v190_v18  ;;  %v247_v53 = vadd.f32 %v236_v28, %v524_v36  ;;  %v258_v54 = vmul.f32 %v236_v28, %v236_v28  ;;  %v266_v55 = vadd.f32 %v255_v25, %v540_v58  ;;  %v240_v36 = vld [vmem:[#allocation8 + $0x38] sm:$0xff]  ;;  %v241_v18 = vld [vmem:[#allocation8 + $0x40] sm:$0xff] }
  0x31   :  { %v217_v51 = vadd.f32 %v216_v29, %v207_v56  ;;  %v248_v57 = vadd.f32 %v237_v44, %v526_v38  ;;  %v267_v60 = vadd.f32 %v256_v32, %v542_v59  ;;  %v277_v34 = vmul.f32 %v244_v30, %v244_v30 }
  0x32   :  { %v259_v35 = vmul.f32 %v237_v44, %v237_v44  ;;  %v268_v0 = vadd.f32 %v257_v41, %v544_v62  ;;  %v278_v1 = vmul.f32 %v245_v45, %v245_v45  ;;  %v279_v4 = vmul.f32 %v246_v37, %v246_v37  ;;  %v242_v62 = vld [vmem:[#allocation8 + $0x48] sm:$0xff] }
  0x33   :  { %v218_v31 = vadd.f32 %v217_v51, %v208_v26  ;;  %v211_v5 = vsub.f32 %v200_v33, %v189_v22  ;;  %v249_v9 = vadd.f32 %v238_v52, %v528_v39  ;;  %v260_v10 = vmul.f32 %v238_v52, %v238_v52 }
  0x34   :  { %v269_v58 = vadd.f32 %v258_v54, %v546_v63  ;;  %v280_v11 = vmul.f32 %v247_v53, %v247_v53  ;;  %v288_v15 = vsub.f32 %v277_v34, %v266_v55  ;;  %v223_v59 = vsel %vm222_vm0, %v212_v50, 0.0  ;;  %v243_v63 = vld [vmem:[#allocation8 + $0x50] sm:$0xf] }
  0x35   :  { %v219_v6 = vadd.f32 %v218_v31, %v209_v46  ;;  %v250_v16 = vadd.f32 %v239_v61, %v530_v40  ;;  %v289_v17 = vsub.f32 %v278_v1, %v267_v60  ;;  %v261_v19 = vmul.f32 %v239_v61, %v239_v61 }
  0x36   :  { %v270_v20 = vadd.f32 %v259_v35, %v548_v2  ;;  %v281_v21 = vmul.f32 %v248_v57, %v248_v57  ;;  %v290_v27 = vsub.f32 %v279_v4, %v268_v0  ;;  %v251_v56 = vadd.f32 %v240_v36, %v532_v42 }
  0x37   :  { %v220_v38 = vadd.f32 %v219_v6, %v210_v49  ;;  %v262_v23 = vmul.f32 %v240_v36, %v240_v36  ;;  %v271_v24 = vadd.f32 %v260_v10, %v553_v7  ;;  %v282_v22 = vmul.f32 %v249_v9, %v249_v9 }
  0x38   :  { %v291_v25 = vsub.f32 %v280_v11, %v269_v58  ;;  %v299_v26 = vadd.f32 %v289_v17, %v288_v15  ;;  %v252_v40 = vadd.f32 %v241_v18, %v534_v43  ;;  %v253_v28 = vadd.f32 %v242_v62, %v536_v47 }
  0x39   :  { %v221_v39 = vadd.f32 %v220_v38, %v211_v5  ;;  %v263_v30 = vmul.f32 %v241_v18, %v241_v18  ;;  %v272_v2 = vadd.f32 %v261_v19, %v555_v8  ;;  %v283_v32 = vmul.f32 %v250_v16, %v250_v16 }
  0x3a   :  { %v292_v33 = vsub.f32 %v281_v21, %v270_v20  ;;  %v300_v44 = vadd.f32 %v299_v26, %v290_v27  ;;  %v254_v42 = vadd.f32 %v243_v63, %v538_v48  ;;  %v264_v37 = vmul.f32 %v242_v62, %v242_v62 }
  0x3b   :  { %v224_v29 = vadd.f32 %v223_v59, %v221_v39  ;;  %v265_v41 = vmul.f32 %v243_v63, %v243_v63  ;;  %v273_v7 = vadd.f32 %v262_v23, %v558_v12  ;;  %v284_v46 = vmul.f32 %v251_v56, %v251_v56 }
  0x3c   :  { %v293_v49 = vsub.f32 %v282_v22, %v271_v24  ;;  %v301_v50 = vadd.f32 %v300_v44, %v291_v25  ;;  %v274_v43 = vadd.f32 %v263_v30, %v560_v13  ;;  %v285_v47 = vmul.f32 %v252_v40, %v252_v40 }
  0x3d   :  { %v225_v45 = vrot.slane %v224_v29, 4  ;;  %v294_v52 = vsub.f32 %v283_v32, %v272_v2  ;;  %v276_v54 = vadd.f32 %v265_v41, %v562_v14  ;;  %v287_v55 = vmul.f32 %v254_v42, %v254_v42 }
  0x3e   :  { %v302_v53 = vadd.f32 %v301_v50, %v292_v33  ;;  %v275_v31 = vadd.f32 %v264_v37, %v577_v3  ;;  %v286_v48 = vmul.f32 %v253_v28, %v253_v28  ;;  %v295_v57 = vsub.f32 %v284_v46, %v273_v7 }
  0x3f   :  { %v226_v51 = vadd.f32 %v225_v45, %v224_v29  ;;  %v296_v12 = vsub.f32 %v285_v47, %v274_v43  ;;  %v298_v0 = vsub.f32 %v287_v55, %v276_v54 }
  0x40   :  { %v303_v60 = vadd.f32 %v302_v53, %v293_v49  ;;  %v297_v1 = vsub.f32 %v286_v48, %v275_v31 }
  0x41   :  { %v227_v8 = vrot.slane %v226_v51, 2  ;;  %v308_v9 = vsel %vm222_vm0, %v298_v0, 0.0 }
  0x42   :  { %v304_v61 = vadd.f32 %v303_v60, %v294_v52 }
  0x43   :  { %v228_v34 = vadd.f32 %v227_v8, %v226_v51 }
  0x44   :  { %v305_v4 = vadd.f32 %v304_v61, %v295_v57 }
  0x45   :  { %v229_v35 = vrot.slane %v228_v34, 1 }
  0x46   :  { %v306_v5 = vadd.f32 %v305_v4, %v296_v12 }
  0x47   :  { %v230_v13 = vadd.f32 %v229_v35, %v228_v34 }
  0x48   :  { %v307_v36 = vadd.f32 %v306_v5, %v297_v1 }
  0x49   :  { %v231_v6 = vmul.f32 0.5, %v230_v13 }
  0x4a   :  { %v309_v14 = vadd.f32 %v308_v9, %v307_v36 }
  0x4b   :  { %232 = vst [vmem:[#allocation10] sm:$0x1] %v231_v6 }
  0x4c   :  { %v310_v10 = vrot.slane %v309_v14, 4 }
  0x4e   :  { %v311_v3 = vadd.f32 %v310_v10, %v309_v14 }
  0x50   :  { %v312_v58 = vrot.slane %v311_v3, 2 }
  0x52   :  { %v313_v11 = vadd.f32 %v312_v58, %v311_v3 }
  0x54   :  { %v314_v15 = vrot.slane %v313_v11, 1 }
  0x56   :  { %v315_v38 = vadd.f32 %v314_v15, %v313_v11 }
  0x58   :  { %v316_v59 = vmul.f32 0.5, %v315_v38 }
  0x5a   :  { %317 = vst [vmem:[#allocation10 + $0x1] sm:$0x1] %v316_v59 }
  0x5b   :  { %328 = dma.vmem_to_hbm [thread:$0]  %s324_s3, 32, %s326_s11, [#allocation4]  }
  0x5c   :  { %470 = dma.done.wait [#allocation4], 32  }
  0x5d   :  { %471 = vsyncadd [#allocation4], 4294967264 }
  0x5e   :  { %333 = vsyncpa [#allocation3], 1 }
  0x5f   :  { %334 = vsyncpa [#allocation6], 1 }
  0x60   :  { %335 = vsyncpa [#allocation9], 1 }
  0x61   :  { %336 = vsyncpa [#allocation4], 1 }

</bundles_post_ra>
